<compile_context>
chip_gen: v6e
topology: v6e:2x2x1
jax: 0.10.0
libtpu: 0.0.40
codegen_flags: <defaults>
</compile_context>

<pallas_src>
import functools

import jax
import jax.numpy as jnp
from jax.experimental import pallas as pl
from jax.experimental.pallas import tpu as pltpu


def _round_up(x, m):
    return (x + m - 1) // m * m


def _device_kind():
    try:
        return jax.devices()[0].device_kind.lower()
    except Exception:
        return ""


def _deberta_output_kernel(x_ref, w_ref, b_ref, res_ref, gamma_ref, beta_ref,
                           o_ref, acc_ref, *, eps):
    # x_ref:     (TM, TK)  tile of hidden_states (intermediate activations)
    # w_ref:     (TK, H)   K-slab of dense weight ([in, out] layout)
    # b_ref:     (1, H)    dense bias
    # res_ref:   (TM, H)   tile of input_tensor (residual)
    # gamma_ref: (1, H)    LayerNorm weight
    # beta_ref:  (1, H)    LayerNorm bias
    # acc_ref:   (TM, H)   f32 VMEM accumulator (persists across the K axis)
    k = pl.program_id(1)

    @pl.when(k == 0)
    def _():
        # Fold dense bias + residual (dropout = identity at inference) into
        # the accumulator init: the k==0 store does useful work and the two
        # (TM, H) f32 adds disappear from the last-k (drain) critical path.
        acc_ref[...] = (b_ref[...].astype(jnp.float32)
                        + res_ref[...].astype(jnp.float32))

    # MXU matmul in the native input dtype, f32 accumulation.
    acc_ref[...] += jnp.dot(x_ref[...], w_ref[...],
                            preferred_element_type=jnp.float32)

    @pl.when(k == pl.num_programs(1) - 1)
    def _():
        # LayerNorm over last dim (biased variance, eps inside rsqrt) in f32.
        y = acc_ref[...]
        mean = jnp.mean(y, axis=-1, keepdims=True)
        centered = y - mean
        var = jnp.mean(centered * centered, axis=-1, keepdims=True)
        inv = jax.lax.rsqrt(var + eps)
        normed = (centered * inv * gamma_ref[...].astype(jnp.float32)
                  + beta_ref[...].astype(jnp.float32))
        o_ref[...] = normed.astype(o_ref.dtype)


def _pick_tiles(M, I, H, in_dtype, out_dtype):
    """Generation-aware tile selection (no whole-tensor padding needed)."""
    kind = _device_kind()
    is_v7 = ("v7" in kind) or ("tpu7" in kind)
    is_v5e = ("v5 lite" in kind) or ("v5e" in kind) or ("v5lite" in kind)

    row_mult = 16 if jnp.dtype(in_dtype) == jnp.bfloat16 else 8

    # --- K tile: lane-aligned AND a divisor of I, so no K padding and no
    # garbage accumulation.  Otherwise fall back to full-K in one step
    # (block dim == full array dim is always legal).
    tk_target = 2048
    if I % 128 == 0 and I > tk_target:
        tile_k = 128
        for cand in range(tk_target, 127, -128):
            if I % cand == 0:
                tile_k = cand
                break
    else:
        tile_k = I

    # --- M tile: big enough to be MXU-bound (W is re-streamed per row tile).
    tm_target = 512 if is_v5e else 1024
    if is_v7 and M >= 2 * row_mult:
        # Ensure >= 2 row tiles so dimension_semantics=("parallel", ...) can
        # shard rows across both v7x TensorCores.
        tm_target = min(tm_target, _round_up(-(-M // 2), row_mult))
    tile_m = M if M <= tm_target else tm_target

    # --- VMEM budget (double-buffered inputs/outputs + f32 accumulator).
    in_b = jnp.dtype(in_dtype).itemsize
    out_b = jnp.dtype(out_dtype).itemsize
    budget = (44 if is_v7 else 90) * 1024 * 1024

    def footprint(tm, tk):
        return (2 * tm * tk * in_b        # x tile
                + 2 * tk * H * in_b       # W slab
                + 2 * tm * H * in_b       # residual tile
                + 2 * tm * H * out_b      # output tile
                + tm * H * 4)             # f32 accumulator

    while footprint(tile_m, tile_k) > budget and tile_m > 2 * row_mult:
        new_tm = _round_up((tile_m + 1) // 2, row_mult)
        if new_tm >= tile_m:
            break
        tile_m = new_tm

    vmem_limit = (48 if is_v7 else 96) * 1024 * 1024
    return tile_m, tile_k, vmem_limit


def deberta_v2_output(hidden_states, input_tensor, w, b, gamma, beta, eps):
    """hidden_states: [B, S, I]; input_tensor: [B, S, H] -> [B, S, H].

    `w` must already be persisted in [I, H] layout (i.e. the torch nn.Linear
    weight transposed ONCE at load time, not per call).
    """
    B, S, I = hidden_states.shape
    H = input_tensor.shape[-1]
    M = B * S

    x2 = hidden_states.reshape(M, I)
    r2 = input_tensor.reshape(M, H)
    b2 = b.reshape(1, H)
    g2 = gamma.reshape(1, H)
    be2 = beta.reshape(1, H)

    out_dtype = input_tensor.dtype
    tile_m, tile_k, vmem_limit = _pick_tiles(M, I, H, x2.dtype, out_dtype)

    num_m_tiles = pl.cdiv(M, tile_m)
    grid = (num_m_tiles, I // tile_k)   # tile_k divides I by construction

    kernel = functools.partial(_deberta_output_kernel, eps=float(eps))

    in_b = jnp.dtype(x2.dtype).itemsize
    w_b = jnp.dtype(w.dtype).itemsize
    out_b = jnp.dtype(out_dtype).itemsize
    cost = pl.CostEstimate(
        flops=2 * M * I * H,
        transcendentals=M,  # one rsqrt per row
        bytes_accessed=(M * I * in_b                      # x, read once
                        + I * H * w_b * num_m_tiles       # W re-read per M tile
                        + M * H * in_b                    # residual
                        + M * H * out_b),                 # output
    )

    out = pl.pallas_call(
        kernel,
        out_shape=jax.ShapeDtypeStruct((M, H), out_dtype),
        grid_spec=pltpu.PrefetchScalarGridSpec(
            num_scalar_prefetch=0,
            grid=grid,
            in_specs=[
                pl.BlockSpec((tile_m, tile_k), lambda i, k: (i, k)),  # x tile
                pl.BlockSpec((tile_k, H), lambda i, k: (k, 0)),       # W k-slab
                pl.BlockSpec((1, H), lambda i, k: (0, 0)),            # bias
                pl.BlockSpec((tile_m, H), lambda i, k: (i, 0)),       # residual
                pl.BlockSpec((1, H), lambda i, k: (0, 0)),            # LN gamma
                pl.BlockSpec((1, H), lambda i, k: (0, 0)),            # LN beta
            ],
            out_specs=pl.BlockSpec((tile_m, H), lambda i, k: (i, 0)),
            scratch_shapes=[pltpu.VMEM((tile_m, H), jnp.float32)],
        ),
        compiler_params=pltpu.CompilerParams(
            dimension_semantics=("parallel", "arbitrary"),
            vmem_limit_bytes=vmem_limit,
        ),
        cost_estimate=cost,
    )(x2, w, b2, r2, g2, be2)

    return out.reshape(B, S, H)


def reference(hidden_states, input_tensor, w, b, gamma, beta, eps):
    h = jnp.einsum("bsi,ih->bsh", hidden_states, w) + b
    y = h + input_tensor
    mean = jnp.mean(y, axis=-1, keepdims=True)
    var = jnp.mean((y - mean) ** 2, axis=-1, keepdims=True)
    return (y - mean) * jax.lax.rsqrt(var + eps) * gamma + beta


if __name__ == "__main__":
    # Small config consistent with the module.
    batch, seq = 2, 8
    intermediate_size, hidden_size = 64, 32
    layer_norm_eps = 1e-7

    key = jax.random.PRNGKey(0)
    k1, k2, k3, k4, k5, k6 = jax.random.split(key, 6)

    hidden_states = jax.random.normal(k1, (batch, seq, intermediate_size),
                                      dtype=jnp.float32)
    input_tensor = jax.random.normal(k2, (batch, seq, hidden_size),
                                     dtype=jnp.float32)

    # nn.Linear(intermediate_size, hidden_size): torch weight is [H, I].
    # Transpose ONCE here (at "weight load" time) and persist [I, H]; the
    # kernel never pays a per-call relayout.
    w_torch_layout = jax.random.normal(k3, (hidden_size, intermediate_size),
                                       dtype=jnp.float32) * 0.05
    w = jnp.asarray(w_torch_layout.T)
    b = jax.random.normal(k4, (hidden_size,), dtype=jnp.float32) * 0.05

    gamma = 1.0 + 0.1 * jax.random.normal(k5, (hidden_size,), dtype=jnp.float32)
    beta = 0.1 * jax.random.normal(k6, (hidden_size,), dtype=jnp.float32)

    # TODO(synk): StableDropout's training-mode masked dropout is not
    # implemented (inference/eval semantics only: dropout = identity).
    out = deberta_v2_output(hidden_states, input_tensor, w, b, gamma, beta,
                            layer_norm_eps)
    out = jax.block_until_ready(out)

    ref = reference(hidden_states, input_tensor, w, b, gamma, beta,
                    layer_norm_eps)
    assert out.shape == (batch, seq, hidden_size)
    assert jnp.allclose(out, ref, atol=1e-4, rtol=1e-4), "mismatch vs reference"

    print("KERNEL_OK")
</pallas_src>

<mosaic_0001>
module attributes {stable_mosaic.version = 11 : i64} {
  func.func @_deberta_output_kernel(%arg0: i32, %arg1: i32, %arg2: memref<16x64xf32, #tpu.memory_space<vmem>>, %arg3: memref<64x32xf32, #tpu.memory_space<vmem>>, %arg4: memref<1x32xf32, #tpu.memory_space<vmem>>, %arg5: memref<16x32xf32, #tpu.memory_space<vmem>>, %arg6: memref<1x32xf32, #tpu.memory_space<vmem>>, %arg7: memref<1x32xf32, #tpu.memory_space<vmem>>, %arg8: memref<16x32xf32, #tpu.memory_space<vmem>>, %arg9: memref<16x32xf32, #tpu.memory_space<vmem>>) attributes {dimension_semantics = [#tpu.dimension_semantics<parallel>, #tpu.dimension_semantics<arbitrary>], iteration_bounds = array<i64: 1, 1>, scalar_prefetch = 0 : i64, scratch_operands = 1 : i64, tpu.core_type = #tpu.core_type<tc>, window_params = [{transform_indices = @transform_0, window_bounds = array<i64: 16, 64>}, {transform_indices = @transform_1, window_bounds = array<i64: 64, 32>}, {pipeline_mode = #tpu.pipeline_mode<synchronous>, transform_indices = @transform_2, window_bounds = array<i64: 1, 32>}, {transform_indices = @transform_3, window_bounds = array<i64: 16, 32>}, {pipeline_mode = #tpu.pipeline_mode<synchronous>, transform_indices = @transform_4, window_bounds = array<i64: 1, 32>}, {pipeline_mode = #tpu.pipeline_mode<synchronous>, transform_indices = @transform_5, window_bounds = array<i64: 1, 32>}, {transform_indices = @transform_6, window_bounds = array<i64: 16, 32>}]} {
    %c0_i32 = arith.constant 0 : i32
    %0 = arith.cmpi eq, %arg1, %c0_i32 : i32
    %1 = arith.extui %0 : i1 to i32
    %c0_i32_0 = arith.constant 0 : i32
    %2 = arith.cmpi ne, %1, %c0_i32_0 : i32
    scf.if %2 {
      %c0_10 = arith.constant 0 : index
      %c0_11 = arith.constant 0 : index
      %12 = vector.load %arg4[%c0_10, %c0_11] : memref<1x32xf32, #tpu.memory_space<vmem>>, vector<1x32xf32>
      %c0_12 = arith.constant 0 : index
      %c0_13 = arith.constant 0 : index
      %13 = vector.load %arg5[%c0_12, %c0_13] : memref<16x32xf32, #tpu.memory_space<vmem>>, vector<16x32xf32>
      %14 = vector.broadcast %12 : vector<1x32xf32> to vector<16x32xf32>
      %15 = arith.addf %14, %13 : vector<16x32xf32>
      %c0_14 = arith.constant 0 : index
      %c0_15 = arith.constant 0 : index
      %16 = vector.load %arg9[%c0_14, %c0_15] : memref<16x32xf32, #tpu.memory_space<vmem>>, vector<16x32xf32>
      tpu.vector_store %arg9[%c0_14, %c0_15], %15 {strides = array<i32>} : memref<16x32xf32, #tpu.memory_space<vmem>>, vector<16x32xf32>,
    } else {
    }
    %c0 = arith.constant 0 : index
    %c0_1 = arith.constant 0 : index
    %3 = vector.load %arg9[%c0, %c0_1] : memref<16x32xf32, #tpu.memory_space<vmem>>, vector<16x32xf32>
    %c0_2 = arith.constant 0 : index
    %c0_3 = arith.constant 0 : index
    %4 = vector.load %arg2[%c0_2, %c0_3] : memref<16x64xf32, #tpu.memory_space<vmem>>, vector<16x64xf32>
    %c0_4 = arith.constant 0 : index
    %c0_5 = arith.constant 0 : index
    %5 = vector.load %arg3[%c0_4, %c0_5] : memref<64x32xf32, #tpu.memory_space<vmem>>, vector<64x32xf32>
    %cst = arith.constant dense<0.000000e+00> : vector<16x32xf32>
    %6 = tpu.matmul %4, %5, %cst {dimension_numbers = #tpu.dot_dimension_numbers<[1], [0], [0], [1], [0, 0, 1, 1], [], []>} : vector<16x64xf32>, vector<64x32xf32>, vector<16x32xf32> -> vector<16x32xf32>
    %7 = arith.addf %3, %6 : vector<16x32xf32>
    %c0_6 = arith.constant 0 : index
    %c0_7 = arith.constant 0 : index
    %8 = vector.load %arg9[%c0_6, %c0_7] : memref<16x32xf32, #tpu.memory_space<vmem>>, vector<16x32xf32>
    tpu.vector_store %arg9[%c0_6, %c0_7], %7 {strides = array<i32>} : memref<16x32xf32, #tpu.memory_space<vmem>>, vector<16x32xf32>,
    %c0_i32_8 = arith.constant 0 : i32
    %9 = arith.cmpi eq, %arg1, %c0_i32_8 : i32
    %10 = arith.extui %9 : i1 to i32
    %c0_i32_9 = arith.constant 0 : i32
    %11 = arith.cmpi ne, %10, %c0_i32_9 : i32
    scf.if %11 {
      %c0_10 = arith.constant 0 : index
      %c0_11 = arith.constant 0 : index
      %12 = vector.load %arg9[%c0_10, %c0_11] : memref<16x32xf32, #tpu.memory_space<vmem>>, vector<16x32xf32>
      %cst_12 = arith.constant dense<0.000000e+00> : vector<16xf32>
      %13 = vector.multi_reduction <add>, %12, %cst_12 [1] : vector<16x32xf32> to vector<16xf32>
      %14 = vector.shape_cast %13 : vector<16xf32> to vector<16x1xf32>
      %cst_13 = arith.constant 3.200000e+01 : f32
      %15 = vector.broadcast %cst_13 : f32 to vector<16x1xf32>
      %16 = arith.divf %14, %15 : vector<16x1xf32>
      %17 = vector.broadcast %16 : vector<16x1xf32> to vector<16x32xf32>
      %18 = arith.subf %12, %17 : vector<16x32xf32>
      %19 = arith.mulf %18, %18 : vector<16x32xf32>
      %cst_14 = arith.constant dense<0.000000e+00> : vector<16xf32>
      %20 = vector.multi_reduction <add>, %19, %cst_14 [1] : vector<16x32xf32> to vector<16xf32>
      %21 = vector.shape_cast %20 : vector<16xf32> to vector<16x1xf32>
      %cst_15 = arith.constant 3.200000e+01 : f32
      %22 = vector.broadcast %cst_15 : f32 to vector<16x1xf32>
      %23 = arith.divf %21, %22 : vector<16x1xf32>
      %cst_16 = arith.constant 1.000000e-07 : f32
      %24 = vector.broadcast %cst_16 : f32 to vector<16x1xf32>
      %25 = arith.addf %23, %24 : vector<16x1xf32>
      %26 = math.rsqrt %25 : vector<16x1xf32>
      %27 = vector.broadcast %26 : vector<16x1xf32> to vector<16x32xf32>
      %28 = arith.mulf %18, %27 : vector<16x32xf32>
      %c0_17 = arith.constant 0 : index
      %c0_18 = arith.constant 0 : index
      %29 = vector.load %arg6[%c0_17, %c0_18] : memref<1x32xf32, #tpu.memory_space<vmem>>, vector<1x32xf32>
      %30 = vector.broadcast %29 : vector<1x32xf32> to vector<16x32xf32>
      %31 = arith.mulf %28, %30 : vector<16x32xf32>
      %c0_19 = arith.constant 0 : index
      %c0_20 = arith.constant 0 : index
      %32 = vector.load %arg7[%c0_19, %c0_20] : memref<1x32xf32, #tpu.memory_space<vmem>>, vector<1x32xf32>
      %33 = vector.broadcast %32 : vector<1x32xf32> to vector<16x32xf32>
      %34 = arith.addf %31, %33 : vector<16x32xf32>
      %c0_21 = arith.constant 0 : index
      %c0_22 = arith.constant 0 : index
      %35 = vector.load %arg8[%c0_21, %c0_22] : memref<16x32xf32, #tpu.memory_space<vmem>>, vector<16x32xf32>
      tpu.vector_store %arg8[%c0_21, %c0_22], %34 {strides = array<i32>} : memref<16x32xf32, #tpu.memory_space<vmem>>, vector<16x32xf32>,
    } else {
    }
    return
  }
  func.func @transform_0(%arg0: i32, %arg1: i32) -> (i32, i32) {
    %c0_i32 = arith.constant 0 : i32
    return %arg0, %arg1 : i32, i32
  }
  func.func @transform_1(%arg0: i32, %arg1: i32) -> (i32, i32) {
    %c0_i32 = arith.constant 0 : i32
    %c0_i32_0 = arith.constant 0 : i32
    return %arg1, %c0_i32 : i32, i32
  }
  func.func @transform_2(%arg0: i32, %arg1: i32) -> (i32, i32) {
    %c0_i32 = arith.constant 0 : i32
    %c0_i32_0 = arith.constant 0 : i32
    %c0_i32_1 = arith.constant 0 : i32
    return %c0_i32, %c0_i32_0 : i32, i32
  }
  func.func @transform_3(%arg0: i32, %arg1: i32) -> (i32, i32) {
    %c0_i32 = arith.constant 0 : i32
    %c0_i32_0 = arith.constant 0 : i32
    return %arg0, %c0_i32 : i32, i32
  }
  func.func @transform_4(%arg0: i32, %arg1: i32) -> (i32, i32) {
    %c0_i32 = arith.constant 0 : i32
    %c0_i32_0 = arith.constant 0 : i32
    %c0_i32_1 = arith.constant 0 : i32
    return %c0_i32, %c0_i32_0 : i32, i32
  }
  func.func @transform_5(%arg0: i32, %arg1: i32) -> (i32, i32) {
    %c0_i32 = arith.constant 0 : i32
    %c0_i32_0 = arith.constant 0 : i32
    %c0_i32_1 = arith.constant 0 : i32
    return %c0_i32, %c0_i32_0 : i32, i32
  }
  func.func @transform_6(%arg0: i32, %arg1: i32) -> (i32, i32) {
    %c0_i32 = arith.constant 0 : i32
    %c0_i32_0 = arith.constant 0 : i32
    return %arg0, %c0_i32 : i32, i32
  }
}

</mosaic_0001>

<bundles_post_ra>
// kernel: tpu_custom_call.1
= control target key start
LH: loop header
LB: loop body
LE: loop exit
PB: predicated region body
PF: predicated region fallthrough
CT: control target
= control target key end

     0   :  { %vm54_vm0 = vcmask 523264   ;;  %vm39_vm1 = vcmask 261120   ;;  %s370_s0 = inlined_call_operand.vmem [shape: f32[16,64], index: 0, kind: input, shape index: {}]   ;;  %s371_s1 = inlined_call_operand.vmem [shape: f32[64,32], index: 1, kind: input, shape index: {}]   ;;  %s372_s2 = inlined_call_operand.vmem [shape: f32[1,32], index: 2, kind: input, shape index: {}]   ;;  %s373_s3 = inlined_call_operand.vmem [shape: f32[16,32], index: 3, kind: input, shape index: {}]   ;;  %s374_s4 = inlined_call_operand.vmem [shape: f32[1,32], index: 4, kind: input, shape index: {}]   ;;  %s375_s5 = inlined_call_operand.vmem [shape: f32[1,32], index: 5, kind: input, shape index: {}]   ;;  %s376_s6 = inlined_call_operand.hbm [shape: f32[16,32], index: 6, kind: output, shape index: {}]  }
   0x1   :  { %v53_v0 = vld [vmem:[%s371_s1 + $0x38] sm:$0xff]  ;;  %v52_v1 = vld [vmem:[%s371_s1 + $0x30] sm:$0xff]  ;;  %v51_v2 = vld [vmem:[%s371_s1 + $0x28] sm:$0xff] }
   0x2   :  { %224 = vmatprep.subr.mxu0 %v53_v0  ;;  %v44_v3 = vld [vmem:[%s370_s0] sm:$0xff]  ;;  %v30_v5 = vld [vmem:[%s373_s3 + $0x8] sm:$0xff] }
   0x3   :  { %225 = vmatpush3.msra.mxu0 %v53_v0  ;;  %240 = vmatprep.mubr.msk.f32.mxu0 %vm54_vm0, %v44_v3  ;;  %v209_v4 = vld [vmem:[%s372_s2] ss:$0 sm:$0xff] }
   0x4   :  { %226 = vmatprep.subr.mxu0 %v52_v1  ;;  %v50_v6 = vld [vmem:[%s371_s1 + $0x20] sm:$0xff]  ;;  %v38_v7 = vadd.f32 %v209_v4, %v30_v5 }
   0x5   :  { %227 = vmatpush3.msra.mxu0 %v52_v1 }
   0x6   :  { %11 = vsyncpa [#allocation4], 0  ;;  %228 = vmatprep.subr.mxu0 %v51_v2  ;;  %v49_v8 = vld [vmem:[%s371_s1 + $0x18] sm:$0xff]  ;;  %41 = vst.msk [vmem:[#allocation2 + $0x8] sm:$0xff] %vm39_vm1, %v38_v7  ;;  %v48_v9 = vld [vmem:[%s371_s1 + $0x10] sm:$0xff]  ;;  %s272_s23 = smov [#allocation3]  }
   0x7   :  { %229 = vmatpush3.msra.mxu0 %v51_v2  ;;  %v47_v10 = vld [vmem:[%s371_s1 + $0x8] sm:$0xff]  ;;  %v46_v11 = vld [vmem:[%s371_s1] sm:$0xff]  ;;  %s198_s24 = sshll.u32 %s272_s23, 4  ;;  %s199_s24 = int_to_ptr.vmem [resolvable:$true] %s198_s24 }
   0x8   :  { %230 = vmatprep.subr.mxu0 %v50_v6  ;;  %v45_v12 = vld [vmem:[%s370_s0 + $0x8] sm:$0xff]  ;;  %v29_v13 = vld [vmem:[%s373_s3] sm:$0xff]  ;;  %s250_s25 = scalar_lea.vmem %s199_s24, 256  ;;  %p255_p1 = scmp.lt.s32.totalorder %s199_s24, %s199_s24 }
   0x9   :  { %231 = vmatpush3.msra.mxu0 %v50_v6  ;;  %v37_v14 = vadd.f32 %v209_v4, %v29_v13  ;;  %v212_v42 = vld [vmem:[%s374_s4] ss:$0 sm:$0xff]  ;;  %p251_p0 = scmp.ne.s32.totalorder %s199_s24, %s250_s25  ;;  %p256_p2 = scmp.lt.s32.totalorder %s250_s25, %s250_s25 }
   0xa   :  { %232 = vmatprep.subr.mxu0 %v49_v8  ;;  %v213_v44 = vld [vmem:[%s375_s5] ss:$0 sm:$0xff] }
   0xb   :  { %233 = vmatpush3.msra.mxu0 %v49_v8  ;;  %40 = vst.msk [vmem:[#allocation2] sm:$0xff] %vm39_vm1, %v37_v14  ;;  %p257_p3 = por %p256_p2, %p255_p1 }
   0xc   :  { %234 = vmatprep.subr.mxu0 %v48_v9 }
   0xd   :  { %235 = vmatpush3.msra.mxu0 %v48_v9  ;;  %v43_v15 = vld [vmem:[#allocation2 + $0x8] sm:$0xff]  ;;  %p258_p4 = pnand %p257_p3, %p251_p0 }
   0xe   :  { %236 = vmatprep.subr.mxu0 %v47_v10 }
   0xf   :  { %237 = vmatpush3.msra.mxu0 %v47_v10 }
  0x10   :  { %238 = vmatprep.subr.mxu0 %v46_v11 }
  0x11   :  { %239 = vmatpush3.msra.mxu0 %v46_v11 }
  0x12   :  { %241 = vmatmul.mubr.msk.f32.vlgmr.msra.gmra.mxu0 %vm54_vm0, %v45_v12  ;;  %v42_v17 = vld [vmem:[#allocation2] sm:$0xff] }
  0xd2   :  { %v242_v16 = vpop.f32.mrf.mxu0 }
  0xd3   :  { %v137_v18 = vadd.f32 %v242_v16, %v43_v15 }
  0xd4   :  { %v127_v19 = vpop.f32.mrf.mxu0 }
  0xd5   :  { %140 = vst.msk [vmem:[#allocation2 + $0x8] sm:$0xff] %vm39_vm1, %v137_v18  ;;  %v136_v20 = vadd.f32 %v127_v19, %v42_v17 }
  0xd7   :  { %139 = vst.msk [vmem:[#allocation2] sm:$0xff] %vm39_vm1, %v136_v20 }
  0xdc   :  { %v145_v23 = vld [vmem:[#allocation2 + $0x8] sm:$0xff] }
  0xdd   :  { %v149_v24 = vsel %vm39_vm1, %v145_v23, 0.0 }
  0xde   :  { %v144_v21 = vld [vmem:[#allocation2] sm:$0xff] }
  0xdf   :  { %v146_v22 = vsel %vm39_vm1, %v144_v21, 0.0 }
  0xe0   :  { %147 = vadd.xlane.f32.xlu0 %v146_v22 }
  0xe4   :  { %150 = vadd.xlane.f32.xlu0 %v149_v24 }
 0x169   :  { %v148_v25 = vpop.xlane.xlu0 %147 }
 0x16a   :  { %v153_v26 = vmul.f32 0.03125, %v148_v25 }
 0x16c   :  { %v155_v27 = vsub.f32 %v144_v21, %v153_v26 }
 0x16d   :  { %v151_v28 = vpop.xlane.xlu0 %150 }
 0x16e   :  { %v154_v29 = vmul.f32 0.03125, %v151_v28  ;;  %v157_v30 = vmul.f32 %v155_v27, %v155_v27 }
 0x170   :  { %v156_v31 = vsub.f32 %v145_v23, %v154_v29  ;;  %v159_v32 = vsel %vm39_vm1, %v157_v30, 0.0 }
 0x171   :  { %160 = vadd.xlane.f32.xlu1 %v159_v32 }
 0x172   :  { %v158_v33 = vmul.f32 %v156_v31, %v156_v31 }
 0x174   :  { %v162_v34 = vsel %vm39_vm1, %v158_v33, 0.0 }
 0x175   :  { %163 = vadd.xlane.f32.xlu1 %v162_v34 }
 0x1fa   :  { %v161_v35 = vpop.xlane.xlu1 %160 }
 0x1fb   :  { %v165_v36 = vmul.f32 0.03125, %v161_v35 }
 0x1fd   :  { %v167_v37 = vadd.f32 1e-07, %v165_v36 }
 0x1fe   :  { %v164_v38 = vpop.xlane.xlu1 %163 }
 0x1ff   :  { %246 = vrsqrt.f32 %v167_v37  ;;  %v166_v39 = vmul.f32 0.03125, %v164_v38 }
 0x201   :  { %v168_v40 = vadd.f32 1e-07, %v166_v39 }
 0x203   :  { %248 = vrsqrt.f32 %v168_v40 }
 0x20c   :  { %v247_v41 = vpop.eup %246 }
 0x20d   :  { %v171_v43 = vmul.f32 %v247_v41, %v155_v27 }
 0x20f   :  { %v180_v45 = vmul.f32 %v212_v42, %v171_v43 }
 0x210   :  { %v249_v46 = vpop.eup %248 }
 0x211   :  { %v172_v47 = vmul.f32 %v249_v46, %v156_v31  ;;  %v189_v48 = vadd.f32 %v213_v44, %v180_v45 }
 0x213   :  { %v181_v49 = vmul.f32 %v212_v42, %v172_v47  ;;  %191 = vst.msk [vmem:[#allocation3] sm:$0xff] %vm39_vm1, %v189_v48 }
 0x215   :  { %v190_v50 = vadd.f32 %v213_v44, %v181_v49 }
 0x217   :  { %192 = vst.msk [vmem:[#allocation3 + $0x8] sm:$0xff] %vm39_vm1, %v190_v50 }
 0x218   :  { %261 = shalt.err (!%p258_p4)
}
 0x219   :  { %s273_s4 = smov 128   ;;  %s274_s5 = smov 8  }
 0x21a   :  { %204 = dma.vmem_to_hbm [thread:$0]  %s199_s24, 256, %s376_s6, [#allocation4], %s273_s4, %s273_s4, %s274_s5  }
 0x21b   :  { %270 = dma.done.wait [#allocation4], 256  }
 0x21c   :  { %271 = vsyncadd [#allocation4], 4294967040 }
 0x21d   :  { %208 = vsyncpa [#allocation4], 1 }

</bundles_post_ra>
